<compile_context>
chip_gen: v6e
topology: v6e:2x2x1
jax: 0.10.0
libtpu: 0.0.40
codegen_flags: <defaults>
</compile_context>

<pallas_src>
import jax
import jax.numpy as jnp
from jax import lax
from jax.experimental import pallas as pl
from jax.experimental.pallas import tpu as pltpu


def _round_up(v, m):
    return ((v + m - 1) // m) * m


def _const_block_spec(block_shape, index_map):
    """BlockSpec for a grid-constant operand; single-buffered when supported."""
    if hasattr(pl, "Buffered"):
        try:
            return pl.BlockSpec(block_shape, index_map, pipeline_mode=pl.Buffered(1))
        except TypeError:  # older Pallas without pipeline_mode -> default double buffering
            pass
    return pl.BlockSpec(block_shape, index_map)


def _pick_row_tile(H_out, N, Wq, C4):
    """Output rows per grid step: bound the bf16 Y tile to ~4 MiB, keep >=2 parallel steps."""
    bytes_per_row = Wq * C4 * 2                        # one Y row in bf16
    cap = max(1, min(64, (4 * 1024 * 1024) // bytes_per_row - 2))
    if N == 1 and H_out >= 2:                          # batch 1: keep both v7x TCs busy
        cap = min(cap, (H_out + 1) // 2)
    R = max(1, min(H_out, cap))
    for r in range(R, R // 2, -1):                     # prefer an exact divisor (no wasted rows)
        if H_out % r == 0:
            R = r
            break
    NB = -(-H_out // R)
    return R, NB


def _make_kernel(R, Wq):
    Lo = R * Wq                                        # flat output length per block

    def kernel(y_ref, w_ref, b_ref, o_ref):
        # y_ref: ((R+2)*Wq, C4) bf16   space-to-depth tile (R output rows + 2 halo Y-rows)
        # w_ref: (4, C_out, C4) bf16   folded per-tap weight matrices
        # b_ref: (C_out, 1)     f32    bias
        # o_ref: (C_out, Lo)           NCHW-flat output slab (lane-dense)
        def tap(t, rhs):
            return lax.dot_general(
                w_ref[t], rhs,
                dimension_numbers=(((1,), (1,)), ((), ())),   # contract C4 (Q.K^T-style NT matmul)
                preferred_element_type=jnp.float32)

        # dx = 0 taps: sublane-aligned ref slices (offsets 0 and Wq, with Wq % 16 == 0).
        acc = b_ref[...] + tap(0, y_ref[pl.ds(0, Lo), :])     # bias folded into the accumulator init
        acc += tap(2, y_ref[pl.ds(Wq, Lo), :])
        # dx = +1 taps: ONE shifted view of the tile, reused for both row phases.
        ysh = y_ref[pl.ds(1, Lo + Wq), :]
        acc += tap(1, ysh[:Lo])
        acc += tap(3, ysh[Wq:Wq + Lo])
        o_ref[...] = acc.astype(o_ref.dtype)

    return kernel


@jax.jit
def downsample_forward(x_nchw, weight, bias):
    """Conv2d(C_in, C_out, 3, stride=2, padding=1) forward.  NCHW in, NCHW out."""
    N, C_in, H, W = x_nchw.shape
    C_out = weight.shape[0]
    H_out = (H - 1) // 2 + 1
    W_out = (W - 1) // 2 + 1
    C4 = 4 * C_in

    Wq = _round_up(W_out + 1, 16)      # Y row width; 16-aligned so bf16 tap slices stay aligned
    R, NB = _pick_row_tile(H_out, N, Wq, C4)
    H_out_p = NB * R
    L_tile = (R + 2) * Wq

    # ---- one fused pad + gather + pixel-unshuffle pass (bf16 result) -----------------------
    # Y[n, r, s, (p*2+q)*C_in + c] = x[n, c, 2r+p-2, 2s+q-2]  (zero outside the image); each
    # row block rb gets Y rows [rb*R, rb*R + R + 2) so its tile is a plain contiguous window.
    pad_b = 2 * (H_out_p + 2) - 2 - H
    pad_r = 2 * Wq - 2 - W
    x_pad = jnp.pad(x_nchw, ((0, 0), (0, 0), (2, pad_b), (2, pad_r)))
    xrow_idx = (2 * R * jnp.arange(NB)[:, None] + jnp.arange(2 * R + 4)[None, :]).reshape(-1)
    xg = jnp.take(x_pad, xrow_idx, axis=2)               # (N, C_in, NB*(2R+4), 2*Wq)
    xg = xg.reshape(N, C_in, NB, R + 2, 2, Wq, 2)         # [n, c, rb, r, p, s, q]
    yt = jnp.transpose(xg, (0, 2, 3, 5, 4, 6, 1))         # [n, rb, r, s, p, q, c]
    yf_t = yt.reshape(N, NB, L_tile, C4).astype(jnp.bfloat16)

    # ---- fold the 3x3 stride-2 weights into 4 stride-1 tap matrices (bf16) -----------------
    # out[:, i*Wq + j] += w2t[2*dy+dx] @ Y[n, (i+dy)*Wq + (j+dx), :]
    w2t = jnp.zeros((4, C_out, C4), jnp.float32)
    for dy in range(2):
        for dx in range(2):
            for p in range(2):
                for q in range(2):
                    ky, kx = 2 * dy + p - 1, 2 * dx + q - 1
                    if 0 <= ky < 3 and 0 <= kx < 3:
                        g = p * 2 + q
                        w2t = w2t.at[dy * 2 + dx, :, g * C_in:(g + 1) * C_in].set(
                            weight[:, :, ky, kx])
    w2t = w2t.astype(jnp.bfloat16)
    b2 = bias.reshape(C_out, 1).astype(jnp.float32)

    Lo = R * Wq
    out_flat = pl.pallas_call(
        _make_kernel(R, Wq),
        out_shape=jax.ShapeDtypeStruct((N, NB, C_out, Lo), x_nchw.dtype),
        grid=(N, NB),
        in_specs=[
            pl.BlockSpec((None, None, L_tile, C4), lambda n, rb: (n, rb, 0, 0)),
            _const_block_spec((4, C_out, C4), lambda n, rb: (0, 0, 0)),
            _const_block_spec((C_out, 1), lambda n, rb: (0, 0)),
        ],
        out_specs=pl.BlockSpec((None, None, C_out, Lo), lambda n, rb: (n, rb, 0, 0)),
        compiler_params=pltpu.CompilerParams(
            dimension_semantics=("parallel", "parallel")),
    )(yf_t, w2t, b2)

    # Already NCHW-ordered per block; one small fused pass drops the per-row gap columns
    # (and padded rows, if any).
    out = out_flat.reshape(N, NB, C_out, R, Wq)
    out = jnp.transpose(out, (0, 2, 1, 3, 4)).reshape(N, C_out, H_out_p, Wq)
    return out[:, :, :H_out, :W_out]


def _reference_conv(x_nchw, weight, bias):
    out = lax.conv_general_dilated(
        x_nchw, weight,
        window_strides=(2, 2),
        padding=((1, 1), (1, 1)),
        dimension_numbers=("NCHW", "OIHW", "NCHW"),
        precision=lax.Precision.HIGHEST,
    )
    return out + bias.reshape(1, -1, 1, 1)


if __name__ == "__main__":
    key = jax.random.PRNGKey(0)
    kx, kw, kb = jax.random.split(key, 3)

    N, C, H, W = 2, 4, 16, 16
    x = jax.random.normal(kx, (N, C, H, W), dtype=jnp.float32)
    # Synthetic parameters with nn.Conv2d(C, C, 3, stride=2, padding=1) shapes.
    weight = 0.1 * jax.random.normal(kw, (C, C, 3, 3), dtype=jnp.float32)
    bias = 0.1 * jax.random.normal(kb, (C,), dtype=jnp.float32)

    y = jax.block_until_ready(downsample_forward(x, weight, bias))
    assert y.shape == (N, C, H // 2, W // 2), y.shape

    # Tight check vs. a reference fed the same bf16-quantized operands (kernel accumulates in f32).
    xq = x.astype(jnp.bfloat16).astype(jnp.float32)
    wq = weight.astype(jnp.bfloat16).astype(jnp.float32)
    y_ref_q = _reference_conv(xq, wq, bias)
    assert jnp.allclose(y, y_ref_q, atol=1e-4, rtol=1e-4), \
        float(jnp.max(jnp.abs(y - y_ref_q)))

    # Loose check vs. the true f32 module output (difference = bf16 operand quantization only).
    y_ref = _reference_conv(x, weight, bias)
    assert jnp.allclose(y, y_ref, atol=5e-2, rtol=5e-2), \
        float(jnp.max(jnp.abs(y - y_ref)))

    print("KERNEL_OK")
</pallas_src>

<mosaic_0001>
module attributes {stable_mosaic.version = 11 : i64} {
  func.func @kernel(%arg0: i32, %arg1: i32, %arg2: memref<1x1x160x16xbf16, #tpu.memory_space<vmem>>, %arg3: memref<4x4x16xbf16, #tpu.memory_space<vmem>>, %arg4: memref<4x1xf32, #tpu.memory_space<vmem>>, %arg5: memref<1x1x4x128xf32, #tpu.memory_space<vmem>>) attributes {dimension_semantics = [#tpu.dimension_semantics<parallel>, #tpu.dimension_semantics<parallel>], iteration_bounds = array<i64: 2, 1>, scalar_prefetch = 0 : i64, scratch_operands = 0 : i64, tpu.core_type = #tpu.core_type<tc>, window_params = [{transform_indices = @transform_0, window_bounds = array<i64: 1, 1, 160, 16>}, {pipeline_mode = #tpu.pipeline_mode<synchronous>, transform_indices = @transform_1, window_bounds = array<i64: 4, 4, 16>}, {pipeline_mode = #tpu.pipeline_mode<synchronous>, transform_indices = @transform_2, window_bounds = array<i64: 4, 1>}, {transform_indices = @transform_3, window_bounds = array<i64: 1, 1, 4, 128>}]} {
    %c0 = arith.constant 0 : index
    %c0_0 = arith.constant 0 : index
    %0 = vector.load %arg4[%c0, %c0_0] : memref<4x1xf32, #tpu.memory_space<vmem>>, vector<4x1xf32>
    %c0_1 = arith.constant 0 : index
    %c0_2 = arith.constant 0 : index
    %c0_3 = arith.constant 0 : index
    %c0_4 = arith.constant 0 : index
    %1 = vector.load %arg2[%c0_1, %c0_2, %c0_3, %c0_4] : memref<1x1x160x16xbf16, #tpu.memory_space<vmem>>, vector<1x1x128x16xbf16>
    %2 = vector.shape_cast %1 : vector<1x1x128x16xbf16> to vector<128x16xbf16>
    %c0_5 = arith.constant 0 : index
    %c0_6 = arith.constant 0 : index
    %c0_7 = arith.constant 0 : index
    %3 = vector.load %arg3[%c0_5, %c0_6, %c0_7] : memref<4x4x16xbf16, #tpu.memory_space<vmem>>, vector<1x4x16xbf16>
    %4 = vector.shape_cast %3 : vector<1x4x16xbf16> to vector<4x16xbf16>
    %cst = arith.constant dense<0.000000e+00> : vector<4x128xf32>
    %5 = tpu.matmul %4, %2, %cst {dimension_numbers = #tpu.dot_dimension_numbers<[1], [1], [0], [0], [0, 0, 1, 0], [], []>} : vector<4x16xbf16>, vector<128x16xbf16>, vector<4x128xf32> -> vector<4x128xf32>
    %6 = vector.broadcast %0 : vector<4x1xf32> to vector<4x128xf32>
    %7 = arith.addf %6, %5 : vector<4x128xf32>
    %c0_8 = arith.constant 0 : index
    %c0_9 = arith.constant 0 : index
    %c16 = arith.constant 16 : index
    %c0_10 = arith.constant 0 : index
    %8 = vector.load %arg2[%c0_8, %c0_9, %c16, %c0_10] : memref<1x1x160x16xbf16, #tpu.memory_space<vmem>>, vector<1x1x128x16xbf16>
    %9 = vector.shape_cast %8 : vector<1x1x128x16xbf16> to vector<128x16xbf16>
    %c2 = arith.constant 2 : index
    %c0_11 = arith.constant 0 : index
    %c0_12 = arith.constant 0 : index
    %10 = vector.load %arg3[%c2, %c0_11, %c0_12] : memref<4x4x16xbf16, #tpu.memory_space<vmem>>, vector<1x4x16xbf16>
    %11 = vector.shape_cast %10 : vector<1x4x16xbf16> to vector<4x16xbf16>
    %cst_13 = arith.constant dense<0.000000e+00> : vector<4x128xf32>
    %12 = tpu.matmul %11, %9, %cst_13 {dimension_numbers = #tpu.dot_dimension_numbers<[1], [1], [0], [0], [0, 0, 1, 0], [], []>} : vector<4x16xbf16>, vector<128x16xbf16>, vector<4x128xf32> -> vector<4x128xf32>
    %13 = arith.addf %7, %12 : vector<4x128xf32>
    %c0_14 = arith.constant 0 : index
    %c0_15 = arith.constant 0 : index
    %c1 = arith.constant 1 : index
    %c0_16 = arith.constant 0 : index
    %14 = vector.load %arg2[%c0_14, %c0_15, %c1, %c0_16] : memref<1x1x160x16xbf16, #tpu.memory_space<vmem>>, vector<1x1x144x16xbf16>
    %15 = vector.shape_cast %14 : vector<1x1x144x16xbf16> to vector<144x16xbf16>
    %16 = vector.extract_strided_slice %15 {offsets = [0, 0], sizes = [128, 16], strides = [1, 1]} : vector<144x16xbf16> to vector<128x16xbf16>
    %c1_17 = arith.constant 1 : index
    %c0_18 = arith.constant 0 : index
    %c0_19 = arith.constant 0 : index
    %17 = vector.load %arg3[%c1_17, %c0_18, %c0_19] : memref<4x4x16xbf16, #tpu.memory_space<vmem>>, vector<1x4x16xbf16>
    %18 = vector.shape_cast %17 : vector<1x4x16xbf16> to vector<4x16xbf16>
    %cst_20 = arith.constant dense<0.000000e+00> : vector<4x128xf32>
    %19 = tpu.matmul %18, %16, %cst_20 {dimension_numbers = #tpu.dot_dimension_numbers<[1], [1], [0], [0], [0, 0, 1, 0], [], []>} : vector<4x16xbf16>, vector<128x16xbf16>, vector<4x128xf32> -> vector<4x128xf32>
    %20 = arith.addf %13, %19 : vector<4x128xf32>
    %21 = vector.extract_strided_slice %15 {offsets = [16, 0], sizes = [128, 16], strides = [1, 1]} : vector<144x16xbf16> to vector<128x16xbf16>
    %c3 = arith.constant 3 : index
    %c0_21 = arith.constant 0 : index
    %c0_22 = arith.constant 0 : index
    %22 = vector.load %arg3[%c3, %c0_21, %c0_22] : memref<4x4x16xbf16, #tpu.memory_space<vmem>>, vector<1x4x16xbf16>
    %23 = vector.shape_cast %22 : vector<1x4x16xbf16> to vector<4x16xbf16>
    %cst_23 = arith.constant dense<0.000000e+00> : vector<4x128xf32>
    %24 = tpu.matmul %23, %21, %cst_23 {dimension_numbers = #tpu.dot_dimension_numbers<[1], [1], [0], [0], [0, 0, 1, 0], [], []>} : vector<4x16xbf16>, vector<128x16xbf16>, vector<4x128xf32> -> vector<4x128xf32>
    %25 = arith.addf %20, %24 : vector<4x128xf32>
    %c0_24 = arith.constant 0 : index
    %c0_25 = arith.constant 0 : index
    %c0_26 = arith.constant 0 : index
    %c0_27 = arith.constant 0 : index
    %26 = vector.load %arg5[%c0_24, %c0_25, %c0_26, %c0_27] : memref<1x1x4x128xf32, #tpu.memory_space<vmem>>, vector<1x1x4x128xf32>
    %27 = vector.shape_cast %26 : vector<1x1x4x128xf32> to vector<4x128xf32>
    %28 = vector.shape_cast %25 : vector<4x128xf32> to vector<1x1x4x128xf32>
    tpu.vector_store %arg5[%c0_24, %c0_25, %c0_26, %c0_27], %28 {strides = array<i32>} : memref<1x1x4x128xf32, #tpu.memory_space<vmem>>, vector<1x1x4x128xf32>,
    return
  }
  func.func @transform_0(%arg0: i32, %arg1: i32) -> (i32, i32, i32, i32) {
    %c0_i32 = arith.constant 0 : i32
    %c0_i32_0 = arith.constant 0 : i32
    %c0_i32_1 = arith.constant 0 : i32
    return %arg0, %arg1, %c0_i32, %c0_i32_0 : i32, i32, i32, i32
  }
  func.func @transform_1(%arg0: i32, %arg1: i32) -> (i32, i32, i32) {
    %c0_i32 = arith.constant 0 : i32
    %c0_i32_0 = arith.constant 0 : i32
    %c0_i32_1 = arith.constant 0 : i32
    %c0_i32_2 = arith.constant 0 : i32
    return %c0_i32, %c0_i32_0, %c0_i32_1 : i32, i32, i32
  }
  func.func @transform_2(%arg0: i32, %arg1: i32) -> (i32, i32) {
    %c0_i32 = arith.constant 0 : i32
    %c0_i32_0 = arith.constant 0 : i32
    %c0_i32_1 = arith.constant 0 : i32
    return %c0_i32, %c0_i32_0 : i32, i32
  }
  func.func @transform_3(%arg0: i32, %arg1: i32) -> (i32, i32, i32, i32) {
    %c0_i32 = arith.constant 0 : i32
    %c0_i32_0 = arith.constant 0 : i32
    %c0_i32_1 = arith.constant 0 : i32
    return %arg0, %arg1, %c0_i32, %c0_i32_0 : i32, i32, i32, i32
  }
}

</mosaic_0001>

<bundles_post_ra>
// kernel: downsample_forward.1
= control target key start
LH: loop header
LB: loop body
LE: loop exit
PB: predicated region body
PF: predicated region fallthrough
CT: control target
= control target key end

     0   :  { %s1077_s12 = smov 0   ;;  %s1079_s13 = smov 0   ;;  %s1238_s0 = inlined_call_operand.vmem [shape: bf16[2,1,160,16], index: 0, kind: input, shape index: {}]   ;;  %s1239_s1 = inlined_call_operand.vmem [shape: bf16[4,4,16], index: 1, kind: input, shape index: {}]   ;;  %s1240_s2 = inlined_call_operand.vmem [shape: f32[4,1], index: 2, kind: input, shape index: {}]   ;;  %s1241_s3 = inlined_call_operand.vmem [shape: f32[2,1,4,128], index: 3, kind: output, shape index: {}]  }
   0x1   :  { %s1081_s14 = smov 0  }
   0x2 LB: > { %s25_s15 = sadd.s32 1, %s1048_s13  ;;  %p819_p0 = scmp.ge.s32.totalorder %s1052_s14, 1  ;;  %s1052_s14 = sphi %s1081_s14, %s13_s14   ;;  %s1048_s13 = sphi %s1079_s13, %s1243_s13   ;;  %s1044_s12 = sphi %s1077_s12, %s1242_s12  }
   0x3   : > { %p27_p1 = scmp.ge.s32.totalorder %s25_s15, 2  ;;  %p157_p2 = scmp.lt.s32.totalorder %s1052_s14, 3 }
   0x5   : > { %s1245_s15 = smov (%p27_p1, %s25_s15), 0  ;;  %p158_p3 = pnand %p819_p0, %p157_p2 }
   0x6   : > { %p187_p4 = scmp.lt.s32.totalorder (!%p158_p3), %s1044_s12, 1 }
   0x7   : > { %161 = sbr.rel (%p158_p3) target bundleno = 344 (0x158), region = 32 }
   0xc   : > { %v1054_v0 = vmov 0.0   ;;  %s1247_s12 = smov (!%p187_p4, %s1044_s12), 1  ;;  %vm1055_vm0 = vmmov 0   ;;  %vm262_vm1 = vcmask 130048   ;;  %v1056_v17 = vmov 0  }
   0xd   : > { %894 = vmatprep.subr.bf16.mxu0 %v1054_v0  ;;  %914 = vmatprep.subr.bf16.mxu1 %v1054_v0  ;;  %s974_s16 = smul.u32 80, %s1247_s12  ;;  %v204_v20 = vld [vmem:[%s1240_s2] sm:$0xf]  ;;  %vm526_vm2 = vsmask.f32 7424  ;;  %s821_s30 = sshll.u32 %s1247_s12, 2 }
   0xe   : > { %910 = vmatprep.mubr.msk.bf16.mxu0 %vm1055_vm0, %v1054_v0  ;;  %930 = vmatprep.mubr.msk.bf16.mxu1 %vm1055_vm0, %v1054_v0  ;;  %v221_v60 = vld [vmem:[%s1239_s1] sm:$0x3]  ;;  %v831_v61 = vld [vmem:[%s1239_s1 + $0x4] sm:$0x3]  ;;  %s202_s6 = scalar_lea.vmem %s1241_s3, %s821_s30 }
   0xf   : > { %s1107_s19 = scalar_lea.vmem %s1238_s0, %s974_s16  ;;  %1002 = vset.pattern.permute.xlu0 %v1056_v17 }
  0x10   : > { %v1003_v1 = vld [vmem:[%s1107_s19 + $0x38] sm:$0xff]   ;;  %v1004_v2 = vld [vmem:[%s1107_s19 + $0x40] sm:$0xff]   ;;  %v1005_v5 = vld [vmem:[%s1107_s19 + $0x30] sm:$0xff]   ;;  %332 = vperm.xlu0 %1002, %v204_v20  }
  0x11   : > { %v288_v3 = vsel %vm262_vm1, %v1003_v1, 0  ;;  %v419_v4 = vsel %vm262_vm1, %v1004_v2, 0  ;;  %v1006_v6 = vld [vmem:[%s1107_s19 + $0x38] sm:$0xff]   ;;  %v285_v7 = vsel %vm262_vm1, %v1005_v5, 0  ;;  %v1007_v9 = vld [vmem:[%s1107_s19 + $0x28] sm:$0xff]   ;;  %v1008_v10 = vld [vmem:[%s1107_s19 + $0x30] sm:$0xff]  }
  0x12   : > { %895 = vmatpush3.bf16.xpose.msra.mxu0 %v288_v3  ;;  %915 = vmatpush3.bf16.xpose.msra.mxu1 %v419_v4  ;;  %v416_v8 = vsel %vm262_vm1, %v1006_v6, 0  ;;  %v282_v11 = vsel %vm262_vm1, %v1007_v9, 0  ;;  %v413_v12 = vsel %vm262_vm1, %v1008_v10, 0  ;;  %v1009_v13 = vld [vmem:[%s1107_s19 + $0x20] sm:$0xff]   ;;  %v1010_v14 = vld [vmem:[%s1107_s19 + $0x28] sm:$0xff]   ;;  %v1011_v18 = vld [vmem:[%s1107_s19 + $0x18] sm:$0xff]  }
  0x13   : > { %896 = vmatprep.subr.bf16.mxu0 %v1054_v0  ;;  %916 = vmatprep.subr.bf16.mxu1 %v1054_v0  ;;  %v279_v15 = vsel %vm262_vm1, %v1009_v13, 0  ;;  %v410_v16 = vsel %vm262_vm1, %v1010_v14, 0  ;;  %v1012_v19 = vld [vmem:[%s1107_s19 + $0x20] sm:$0xff]   ;;  %v276_v21 = vsel %vm262_vm1, %v1011_v18, 0  ;;  %v1013_v23 = vld [vmem:[%s1107_s19 + $0x10] sm:$0xff]   ;;  %v1014_v24 = vld [vmem:[%s1107_s19 + $0x18] sm:$0xff]  }
  0x14   : > { %v407_v22 = vsel %vm262_vm1, %v1012_v19, 0  ;;  %v273_v25 = vsel %vm262_vm1, %v1013_v23, 0  ;;  %v404_v26 = vsel %vm262_vm1, %v1014_v24, 0  ;;  %v478_v27 = vld [vmem:[%s1107_s19 + $0x40] sm:$0xf]  ;;  %v1015_v29 = vld [vmem:[%s1107_s19 + $0x8] sm:$0xff]  }
  0x15   : > { %v479_v28 = vld [vmem:[%s1107_s19 + $0x44] sm:$0xf]  ;;  %v1016_v30 = vld [vmem:[%s1107_s19 + $0x10] sm:$0xff]   ;;  %v1019_v31 = vld [vmem:[%s1107_s19 + $0x38] sm:$0xff]   ;;  %v270_v33 = vsel %vm262_vm1, %v1015_v29, 0  ;;  %v850_v35 = vcombine.low %v478_v27, %v478_v27 }
  0x16   : > { %v853_v32 = vcombine.low %v478_v27, %v479_v28  ;;  %v401_v34 = vsel %vm262_vm1, %v1016_v30, 0  ;;  %v583_v36 = vshll.u32 %v1019_v31, 16  ;;  %v1022_v37 = vld [vmem:[%s1107_s19 + $0x48] ss:$0 sps:$4 sm:$0x11]   ;;  %v1017_v39 = vld [vmem:[%s1107_s19] sm:$0xff]  }
  0x17   : > { %v1018_v40 = vld [vmem:[%s1107_s19 + $0x8] sm:$0xff]   ;;  %v587_v42 = vshrl.u32 %v1019_v31, 16  ;;  %v591_v43 = vshll.u32 %v850_v35, 16  ;;  %v1023_v44 = vld [vmem:[%s1107_s19 + $0x30] sm:$0xff]   ;;  %v680_v47 = vshll.u32 %v1022_v37, 16  ;;  %v267_v48 = vsel %vm262_vm1, %v1017_v39, 0 }
  0x18   : > { %v672_v38 = vshll.u32 %v853_v32, 16  ;;  %v585_v41 = vrot.slane %v583_v36, 1  ;;  %v676_v46 = vshrl.u32 %v853_v32, 16  ;;  %v398_v49 = vsel %vm262_vm1, %v1018_v40, 0  ;;  %v1024_v58 = vld [vmem:[%s1107_s19 + $0x28] sm:$0xff]   ;;  %v1025_v6 = vld [vmem:[%s1107_s19 + $0x20] sm:$0xff]  }
  0x19   : > { %v593_v51 = vrot.slane %v591_v43, 1  ;;  %v575_v52 = vshll.u32 %v1023_v44, 16  ;;  %v682_v54 = vrot.slane %v680_v47, 1  ;;  %v579_v57 = vshrl.u32 %v1023_v44, 16  ;;  %v1028_v29 = vld [vmem:[%s1107_s19 + $0x8] sm:$0xff]   ;;  %v1029_v36 = vld [vmem:[%s1107_s19] sm:$0xff]  }
  0x1a   : > { %897 = vmatpush3.bf16.xpose.msra.mxu0 %v285_v7  ;;  %917 = vmatpush3.bf16.xpose.msra.mxu1 %v416_v8  ;;  %v674_v45 = vrot.slane %v672_v38, 1  ;;  %v589_v50 = vor.u32 %v587_v42, %v585_v41  ;;  %v567_v2 = vshll.u32 %v1024_v58, 16  ;;  %v571_v5 = vshrl.u32 %v1024_v58, 16  ;;  %v841_v47 = vld [vmem:[%s1239_s1 + $0x2] sm:$0x3] }
  0x1b   : > { %898 = vmatprep.subr.bf16.mxu0 %v1054_v0  ;;  %918 = vmatprep.subr.bf16.mxu1 %v1054_v0  ;;  %v577_v56 = vrot.slane %v575_v52, 1  ;;  %v563_v14 = vshrl.u32 %v1025_v6, 16  ;;  %v535_v32 = vshll.u32 %v1028_v29, 16  ;;  %v539_v35 = vshrl.u32 %v1028_v29, 16 }
  0x1c   : > { %v678_v53 = vor.u32 %v676_v46, %v674_v45  ;;  %v594_v55 = vsel %vm526_vm2, %v589_v50, %v593_v51  ;;  %v569_v4 = vrot.slane %v567_v2, 1  ;;  %v675_v7 = vsel %vm526_vm2, %v589_v50, %v674_v45 }
  0x1d   : > { %v620_v62 = vsel %vm262_vm1, %v594_v55, 0  ;;  %v581_v1 = vor.u32 %v579_v57, %v577_v56  ;;  %v688_v9 = vsel %vm262_vm1, %v675_v7, 0  ;;  %v530_v39 = vshll.u32 %v1029_v36, 16 }
  0x1e   : > { %v683_v59 = vsel %vm526_vm2, %v678_v53, %v682_v54  ;;  %v573_v10 = vor.u32 %v571_v5, %v569_v4 }
  0x1f   : > { %v691_v63 = vsel %vm262_vm1, %v683_v59, 0  ;;  %v586_v3 = vsel %vm526_vm2, %v581_v1, %v585_v41  ;;  %v528_v41 = vshrl.u32 %v1029_v36, 16  ;;  %v532_v42 = vrot.slane %v530_v39, 1 }
  0x20   : > { %v617_v8 = vsel %vm262_vm1, %v586_v3, 0 }
  0x21   : > { %v533_v44 = vor.u32 %v532_v42, %v528_v41 }
  0x22   : > { %899 = vmatpush3.bf16.xpose.msra.mxu0 %v282_v11  ;;  %919 = vmatpush3.bf16.xpose.msra.mxu1 %v413_v12  ;;  %v559_v11 = vshll.u32 %v1025_v6, 16  ;;  %v578_v12 = vsel %vm526_vm2, %v573_v10, %v577_v56 }
  0x23   : > { %900 = vmatprep.subr.bf16.mxu0 %v1054_v0  ;;  %920 = vmatprep.subr.bf16.mxu1 %v1054_v0 }
  0x24   : > { %v561_v13 = vrot.slane %v559_v11, 1 }
  0x26   : > { %v565_v17 = vor.u32 %v563_v14, %v561_v13 }
  0x28   : > { %v570_v19 = vsel %vm526_vm2, %v565_v17, %v569_v4 }
  0x29   : > { %v611_v23 = vsel %vm262_vm1, %v570_v19, 0 }
  0x2a   : > { %901 = vmatpush3.bf16.xpose.msra.mxu0 %v279_v15  ;;  %921 = vmatpush3.bf16.xpose.msra.mxu1 %v410_v16  ;;  %v1026_v15 = vld [vmem:[%s1107_s19 + $0x18] sm:$0xff]   ;;  %v614_v16 = vsel %vm262_vm1, %v578_v12, 0 }
  0x2b   : > { %902 = vmatprep.subr.bf16.mxu0 %v1054_v0  ;;  %922 = vmatprep.subr.bf16.mxu1 %v1054_v0  ;;  %v551_v18 = vshll.u32 %v1026_v15, 16 }
  0x2d   : > { %v553_v20 = vrot.slane %v551_v18, 1 }
  0x32   : > { %903 = vmatpush3.bf16.xpose.msra.mxu0 %v276_v21  ;;  %923 = vmatpush3.bf16.xpose.msra.mxu1 %v407_v22  ;;  %v555_v21 = vshrl.u32 %v1026_v15, 16  ;;  %v1027_v22 = vld [vmem:[%s1107_s19 + $0x10] sm:$0xff]  }
  0x33   : > { %904 = vmatprep.subr.bf16.mxu0 %v1054_v0  ;;  %924 = vmatprep.subr.bf16.mxu1 %v1054_v0  ;;  %v547_v28 = vshrl.u32 %v1027_v22, 16 }
  0x34   : > { %v557_v24 = vor.u32 %v555_v21, %v553_v20 }
  0x3a   : > { %905 = vmatpush3.bf16.xpose.msra.mxu0 %v273_v25  ;;  %925 = vmatpush3.bf16.xpose.msra.mxu1 %v404_v26  ;;  %v543_v25 = vshll.u32 %v1027_v22, 16  ;;  %v562_v26 = vsel %vm526_vm2, %v557_v24, %v561_v13 }
  0x3b   : > { %906 = vmatprep.subr.bf16.mxu0 %v1054_v0  ;;  %926 = vmatprep.subr.bf16.mxu1 %v1054_v0  ;;  %v608_v30 = vsel %vm262_vm1, %v562_v26, 0 }
  0x3c   : > { %v545_v27 = vrot.slane %v543_v25, 1 }
  0x3e   : > { %v549_v31 = vor.u32 %v547_v28, %v545_v27 }
  0x42   : > { %907 = vmatpush3.bf16.xpose.msra.mxu0 %v270_v33  ;;  %927 = vmatpush3.bf16.xpose.msra.mxu1 %v401_v34  ;;  %v554_v33 = vsel %vm526_vm2, %v549_v31, %v553_v20  ;;  %v537_v34 = vrot.slane %v535_v32, 1 }
  0x43   : > { %908 = vmatprep.subr.bf16.mxu0 %v1054_v0  ;;  %928 = vmatprep.subr.bf16.mxu1 %v1054_v0  ;;  %v605_v37 = vsel %vm262_vm1, %v554_v33, 0 }
  0x44   : > { %v541_v38 = vor.u32 %v539_v35, %v537_v34  ;;  %v538_v45 = vsel %vm526_vm2, %v533_v44, %v537_v34 }
  0x45   : > { %v599_v46 = vsel %vm262_vm1, %v538_v45, 0 }
  0x46   : > { %v546_v40 = vsel %vm526_vm2, %v541_v38, %v545_v27 }
  0x47   : > { %v602_v43 = vsel %vm262_vm1, %v546_v40, 0 }
  0x4a   : > { %909 = vmatpush3.bf16.xpose.msra.mxu0 %v267_v48  ;;  %929 = vmatpush3.bf16.xpose.msra.mxu1 %v398_v49  ;;  %v852_v48 = vld [vmem:[%s1239_s1 + $0x6] sm:$0x3] }
  0x4b   : > { %934 = vmatprep.subr.bf16.mxu0 %v1054_v0  ;;  %954 = vmatprep.subr.bf16.mxu1 %v1054_v0 }
  0x51   : > { %911 = vmatmul.mubr.msk.bf16.vlgmr.msra.gmra.mxu0 %vm262_vm1, %v221_v60  ;;  %931 = vmatmul.mubr.msk.bf16.vlgmr.msra.gmra.mxu1 %vm262_vm1, %v831_v61 }
  0x52   : > { %935 = vmatpush3.bf16.xpose.msra.mxu0 %v620_v62  ;;  %955 = vmatpush3.bf16.xpose.msra.mxu1 %v691_v63 }
  0x53   : > { %936 = vmatprep.subr.bf16.mxu0 %v1054_v0  ;;  %956 = vmatprep.subr.bf16.mxu1 %v1054_v0 }
  0x54   : > { %950 = vmatprep.mubr.msk.bf16.mxu0 %vm1055_vm0, %v1054_v0  ;;  %970 = vmatprep.mubr.msk.bf16.mxu1 %vm1055_vm0, %v1054_v0 }
  0x5a   : > { %937 = vmatpush3.bf16.xpose.msra.mxu0 %v617_v8  ;;  %957 = vmatpush3.bf16.xpose.msra.mxu1 %v688_v9 }
  0x5b   : > { %938 = vmatprep.subr.bf16.mxu0 %v1054_v0  ;;  %958 = vmatprep.subr.bf16.mxu1 %v1054_v0 }
  0x62   : > { %939 = vmatpush3.bf16.xpose.msra.mxu0 %v614_v16  ;;  %959 = vmatpush3.bf16.xpose.msra.mxu1 %v617_v8 }
  0x63   : > { %940 = vmatprep.subr.bf16.mxu0 %v1054_v0  ;;  %960 = vmatprep.subr.bf16.mxu1 %v1054_v0 }
  0x6a   : > { %941 = vmatpush3.bf16.xpose.msra.mxu0 %v611_v23  ;;  %961 = vmatpush3.bf16.xpose.msra.mxu1 %v614_v16 }
  0x6b   : > { %942 = vmatprep.subr.bf16.mxu0 %v1054_v0  ;;  %962 = vmatprep.subr.bf16.mxu1 %v1054_v0 }
  0x72   : > { %943 = vmatpush3.bf16.xpose.msra.mxu0 %v608_v30  ;;  %963 = vmatpush3.bf16.xpose.msra.mxu1 %v611_v23 }
  0x73   : > { %944 = vmatprep.subr.bf16.mxu0 %v1054_v0  ;;  %964 = vmatprep.subr.bf16.mxu1 %v1054_v0 }
  0x7a   : > { %945 = vmatpush3.bf16.xpose.msra.mxu0 %v605_v37  ;;  %965 = vmatpush3.bf16.xpose.msra.mxu1 %v608_v30 }
  0x7b   : > { %946 = vmatprep.subr.bf16.mxu0 %v1054_v0  ;;  %966 = vmatprep.subr.bf16.mxu1 %v1054_v0 }
  0x82   : > { %947 = vmatpush3.bf16.xpose.msra.mxu0 %v602_v43  ;;  %967 = vmatpush3.bf16.xpose.msra.mxu1 %v605_v37 }
  0x83   : > { %948 = vmatprep.subr.bf16.mxu0 %v1054_v0  ;;  %968 = vmatprep.subr.bf16.mxu1 %v1054_v0 }
  0x8a   : > { %949 = vmatpush3.bf16.xpose.msra.mxu0 %v599_v46  ;;  %969 = vmatpush3.bf16.xpose.msra.mxu1 %v602_v43 }
  0x8b   : > { %v333_v56 = vpop.permute.xlu0 %332 }
  0x91   : > { %951 = vmatmul.mubr.msk.bf16.vlgmr.msra.gmra.mxu0 %vm262_vm1, %v841_v47  ;;  %971 = vmatmul.mubr.msk.bf16.vlgmr.msra.gmra.mxu1 %vm262_vm1, %v852_v48 }
 0x111   : > { %v324_v0 = vpop.f32.mrf.mxu0  ;;  %v455_v49 = vpop.f32.mrf.mxu1 }
 0x112   : > { %v335_v57 = vadd.f32 %v333_v56, %v324_v0 }
 0x113   : > { %v912_v50 = vpop.f32.mrf.mxu0  ;;  %v932_v51 = vpop.f32.mrf.mxu1 }
 0x114   : > { %v461_v58 = vadd.f32 %v455_v49, %v335_v57 }
 0x115   : > { %v327_v52 = vpop.f32.mrf.mxu0  ;;  %v458_v53 = vpop.f32.mrf.mxu1 }
 0x117   : > { %v913_v54 = vpop.f32.mrf.mxu0  ;;  %v933_v55 = vpop.f32.mrf.mxu1 }
 0x151   : > { %v656_v59 = vpop.f32.mrf.mxu0  ;;  %v727_v61 = vpop.f32.mrf.mxu1 }
 0x152   : > { %v662_v60 = vadd.f32 %v656_v59, %v461_v58 }
 0x153   : > { %v952_v62 = vpop.f32.mrf.mxu0  ;;  %v972_v1 = vpop.f32.mrf.mxu1 }
 0x154   : > { %v733_v63 = vadd.f32 %v727_v61, %v662_v60 }
 0x155   : > { %v659_v2 = vpop.f32.mrf.mxu0  ;;  %v730_v3 = vpop.f32.mrf.mxu1 }
 0x156   : > { %734 = vst [vmem:[%s202_s6] sm:$0xf] %v733_v63 }
 0x157   : > { %v953_v4 = vpop.f32.mrf.mxu0  ;;  %v973_v5 = vpop.f32.mrf.mxu1 }
 0x158 PF: > { %s13_s14 = sadd.s32 1, %s1052_s14   ;;  %s1242_s12 = smov %s1048_s13 }
 0x159   : > { %p10_p5 = scmp.ge.s32.totalorder %s13_s14, 4   ;;  %s1243_s13 = smov %s1245_s15 }
 0x15b   :  { %12 = sbr.rel (!%p10_p5) target bundleno = 2 (0x2), region = 65 }

</bundles_post_ra>
